<compile_context>
chip_gen: v6e
topology: v6e:2x2x1
jax: 0.10.0
libtpu: 0.0.40
codegen_flags: <defaults>
</compile_context>

<pallas_src>
import functools
import math

import jax
import jax.numpy as jnp
from jax import lax
from jax.experimental import pallas as pl
from jax.experimental.pallas import tpu as pltpu


# ----------------------------- tiling helpers ------------------------------

def _tile_sub(dim, target):
    """Tile size for a sublane (second-to-last) block axis: multiple of 8 or full dim."""
    if dim <= target:
        return dim
    t = target
    while t >= 8:
        if dim % t == 0:
            return t
        t //= 2
    return dim


def _tile_lane(dim, target):
    """Tile size for a lane (last) block axis: multiple of 128 or full dim."""
    if dim <= target:
        return dim
    t = target
    while t >= 128:
        if dim % t == 0:
            return t
        t //= 2
    return dim


# ----------------------------- Pallas kernels ------------------------------

def _linear_kernel(*refs, activation, transpose_rhs, has_bias):
    if has_bias:
        x_ref, w_ref, b_ref, o_ref, acc_ref = refs
    else:
        x_ref, w_ref, o_ref, acc_ref = refs
        b_ref = None

    @pl.when(pl.program_id(2) == 0)
    def _():
        acc_ref[...] = jnp.zeros_like(acc_ref)

    x = x_ref[...]
    w = w_ref[...]
    if transpose_rhs:
        # x: (tm, tk), w: (tn, tk) -> contract last dims
        acc_ref[...] += lax.dot_general(
            x, w, (((1,), (1,)), ((), ())), preferred_element_type=jnp.float32)
    else:
        acc_ref[...] += jnp.dot(x, w, preferred_element_type=jnp.float32)

    @pl.when(pl.program_id(2) == pl.num_programs(2) - 1)
    def _():
        y = acc_ref[...]
        if b_ref is not None:
            y = y + b_ref[...]
        if activation == "gelu":
            # tanh-approx GELU (OpenAI GPT "gelu_new"), f32 on the EUP/VPU path
            y = 0.5 * y * (1.0 + jnp.tanh(
                0.7978845608028654 * (y + 0.044715 * y * y * y)))
        o_ref[...] = y.astype(o_ref.dtype)


def linear(x, w, b=None, activation=None, transpose_rhs=False,
           out_dtype=jnp.bfloat16, tm=256, tn=256, tk=512):
    """y = x @ w (+ b), with w given as (K, N) or (N, K) if transpose_rhs.

    x: (M, K) bf16, w bf16, b: (N,) f32 or None -> (M, N) out_dtype.
    """
    M, K = x.shape
    if transpose_rhs:
        N, Kw = w.shape
    else:
        Kw, N = w.shape
    assert K == Kw

    tm = _tile_sub(M, tm)
    tn = _tile_lane(N, tn)
    tk = _tile_lane(K, tk)
    grid = (M // tm, N // tn, K // tk)

    in_specs = [pl.BlockSpec((tm, tk), lambda i, j, k: (i, k))]
    if transpose_rhs:
        in_specs.append(pl.BlockSpec((tn, tk), lambda i, j, k: (j, k)))
    else:
        in_specs.append(pl.BlockSpec((tk, tn), lambda i, j, k: (k, j)))
    args = [x, w]
    if b is not None:
        in_specs.append(pl.BlockSpec((1, tn), lambda i, j, k: (0, j)))
        args.append(b.reshape(1, N))

    return pl.pallas_call(
        functools.partial(_linear_kernel, activation=activation,
                          transpose_rhs=transpose_rhs, has_bias=b is not None),
        out_shape=jax.ShapeDtypeStruct((M, N), out_dtype),
        grid=grid,
        in_specs=in_specs,
        out_specs=pl.BlockSpec((tm, tn), lambda i, j, k: (i, j)),
        scratch_shapes=[pltpu.VMEM((tm, tn), jnp.float32)],
        compiler_params=pltpu.CompilerParams(
            dimension_semantics=("parallel", "parallel", "arbitrary")),
    )(*args)


def _ln_res_kernel(x_ref, r_ref, g_ref, b_ref, o_ref, *, eps):
    # residual add fused into the layernorm; all math in f32
    x = x_ref[...].astype(jnp.float32) + r_ref[...].astype(jnp.float32)
    mu = jnp.mean(x, axis=-1, keepdims=True)
    xc = x - mu
    var = jnp.mean(xc * xc, axis=-1, keepdims=True)
    xn = xc * lax.rsqrt(var + eps)
    o_ref[...] = (xn * g_ref[...] + b_ref[...]).astype(o_ref.dtype)


def layernorm_residual(x, res, gamma, beta, eps=1e-5, tm=256,
                       out_dtype=jnp.bfloat16):
    """LayerNorm(x + res) over the last dim. x, res: (M, H); gamma/beta: (H,) f32."""
    M, H = x.shape
    tm = _tile_sub(M, tm)
    return pl.pallas_call(
        functools.partial(_ln_res_kernel, eps=eps),
        out_shape=jax.ShapeDtypeStruct((M, H), out_dtype),
        grid=(M // tm,),
        in_specs=[
            pl.BlockSpec((tm, H), lambda i: (i, 0)),
            pl.BlockSpec((tm, H), lambda i: (i, 0)),
            pl.BlockSpec((1, H), lambda i: (0, 0)),
            pl.BlockSpec((1, H), lambda i: (0, 0)),
        ],
        out_specs=pl.BlockSpec((tm, H), lambda i: (i, 0)),
        compiler_params=pltpu.CompilerParams(
            dimension_semantics=("parallel",)),
    )(x, res, gamma.reshape(1, H), beta.reshape(1, H))


def _flash_attn_kernel(q_ref, k_ref, v_ref, o_ref, m_ref, l_ref, acc_ref,
                       *, scale, tq, tkv):
    qi = pl.program_id(1)
    ki = pl.program_id(2)

    @pl.when(ki == 0)
    def _():
        m_ref[...] = jnp.full_like(m_ref, -1e30)
        l_ref[...] = jnp.zeros_like(l_ref)
        acc_ref[...] = jnp.zeros_like(acc_ref)

    # Skip kv blocks that are entirely above the causal diagonal.
    @pl.when(ki * tkv <= qi * tq + (tq - 1))
    def _():
        # fold 1/sqrt(Dh) into q (tq x Dh mul instead of tq x tkv)
        q = (q_ref[0].astype(jnp.float32) * scale).astype(q_ref.dtype)
        k = k_ref[0]
        v = v_ref[0]
        s = lax.dot_general(q, k, (((1,), (1,)), ((), ())),
                            preferred_element_type=jnp.float32)   # (tq, tkv)
        row = qi * tq + lax.broadcasted_iota(jnp.int32, (tq, tkv), 0)
        col = ki * tkv + lax.broadcasted_iota(jnp.int32, (tq, tkv), 1)
        s = jnp.where(col <= row, s, -1e30)

        m_prev = m_ref[...]
        m_new = jnp.maximum(m_prev, jnp.max(s, axis=-1, keepdims=True))
        alpha = jnp.exp(m_prev - m_new)
        p = jnp.exp(s - m_new)
        l_ref[...] = alpha * l_ref[...] + jnp.sum(p, axis=-1, keepdims=True)
        acc_ref[...] = alpha * acc_ref[...] + lax.dot_general(
            p.astype(v.dtype), v, (((1,), (0,)), ((), ())),
            preferred_element_type=jnp.float32)
        m_ref[...] = m_new

    @pl.when(ki == pl.num_programs(2) - 1)
    def _():
        inv_l = pl.reciprocal(l_ref[...], approx=True)
        o_ref[0] = (acc_ref[...] * inv_l).astype(o_ref.dtype)


def causal_attention(q, k, v, tq=128, tkv=256):
    """q, k, v: (B*num_heads, T, Dh) bf16 -> (B*num_heads, T, Dh) bf16."""
    BH, T, Dh = q.shape
    scale = 1.0 / math.sqrt(Dh)
    tq = _tile_sub(T, tq)
    tkv = _tile_sub(T, tkv)

    q_spec = pl.BlockSpec((1, tq, Dh), lambda b, qi, ki: (b, qi, 0))
    kv_spec = pl.BlockSpec((1, tkv, Dh), lambda b, qi, ki: (b, ki, 0))
    return pl.pallas_call(
        functools.partial(_flash_attn_kernel, scale=scale, tq=tq, tkv=tkv),
        out_shape=jax.ShapeDtypeStruct((BH, T, Dh), jnp.bfloat16),
        grid=(BH, T // tq, T // tkv),
        in_specs=[q_spec, kv_spec, kv_spec],
        out_specs=q_spec,
        scratch_shapes=[
            pltpu.VMEM((tq, 1), jnp.float32),    # running max
            pltpu.VMEM((tq, 1), jnp.float32),    # running denom
            pltpu.VMEM((tq, Dh), jnp.float32),   # output accumulator
        ],
        compiler_params=pltpu.CompilerParams(
            dimension_semantics=("parallel", "parallel", "arbitrary")),
    )(q, k, v)


# ------------------------------ model glue ---------------------------------

def init_params(key, vocab_size, max_len, hidden_size, num_heads, num_layers):
    ks = iter(jax.random.split(key, 4 + 8 * num_layers))
    std = 0.02

    def normal(shape):
        # weights stored in bf16 (MXU inputs); biases / LN params stay f32
        return (std * jax.random.normal(next(ks), shape, dtype=jnp.float32)
                ).astype(jnp.bfloat16)

    params = {
        "wte": normal((vocab_size, hidden_size)),   # token embedding (tied lm_head)
        "wpe": normal((max_len, hidden_size)),      # position embedding
        "blocks": [],
    }
    for _ in range(num_layers):
        blk = {
            # weights stored as (in, out) so the kernel computes x @ W + b
            "c_attn_w": normal((hidden_size, 3 * hidden_size)),
            "c_attn_b": jnp.zeros((3 * hidden_size,), jnp.float32),
            "c_proj_w": normal((hidden_size, hidden_size)),
            "c_proj_b": jnp.zeros((hidden_size,), jnp.float32),
            "ln1_g": jnp.ones((hidden_size,), jnp.float32),
            "ln1_b": jnp.zeros((hidden_size,), jnp.float32),
            "fc_w": normal((hidden_size, 4 * hidden_size)),
            "fc_b": jnp.zeros((4 * hidden_size,), jnp.float32),
            "mlp_proj_w": normal((4 * hidden_size, hidden_size)),
            "mlp_proj_b": jnp.zeros((hidden_size,), jnp.float32),
            "ln2_g": jnp.ones((hidden_size,), jnp.float32),
            "ln2_b": jnp.zeros((hidden_size,), jnp.float32),
        }
        params["blocks"].append(blk)
    return params


def block_forward(p, x2, B, T, num_heads):
    """x2: (B*T, H) bf16 -> (B*T, H) bf16."""
    H = x2.shape[-1]
    Dh = H // num_heads

    # self-attention
    qkv = linear(x2, p["c_attn_w"], p["c_attn_b"])            # (B*T, 3H) bf16
    qkv = qkv.reshape(B, T, 3, num_heads, Dh)
    # TODO(synk): q/k/v head split still uses XLA transposes; a data-dependent
    # BlockSpec into the packed qkv tensor would hit (8,128) lane constraints
    # for Dh < 128, so the copies are kept.
    q = qkv[:, :, 0].transpose(0, 2, 1, 3).reshape(B * num_heads, T, Dh)
    k = qkv[:, :, 1].transpose(0, 2, 1, 3).reshape(B * num_heads, T, Dh)
    v = qkv[:, :, 2].transpose(0, 2, 1, 3).reshape(B * num_heads, T, Dh)
    attn = causal_attention(q, k, v)                          # (B*nh, T, Dh)
    attn = attn.reshape(B, num_heads, T, Dh).transpose(0, 2, 1, 3).reshape(B * T, H)
    attn = linear(attn, p["c_proj_w"], p["c_proj_b"])

    # post-LN residual (GPT-1 / HF OpenAIGPT block), residual fused into LN
    x2 = layernorm_residual(x2, attn, p["ln1_g"], p["ln1_b"])

    # MLP
    h = linear(x2, p["fc_w"], p["fc_b"], activation="gelu")
    h = linear(h, p["mlp_proj_w"], p["mlp_proj_b"])
    x2 = layernorm_residual(x2, h, p["ln2_g"], p["ln2_b"])
    return x2


def gpt_forward(params, input_ids, num_heads):
    B, T = input_ids.shape
    vocab_size, H = params["wte"].shape
    assert T <= params["wpe"].shape[0]

    tok_emb = jnp.take(params["wte"], input_ids, axis=0)      # (B, T, H) bf16
    pos_emb = params["wpe"][:T][None, :, :]                   # (1, T, H)
    x2 = (tok_emb + pos_emb).reshape(B * T, H)                # dropout = identity (eval)

    for blk in params["blocks"]:
        x2 = block_forward(blk, x2, B, T, num_heads)

    # lm_head: tied to token embedding, no bias, no materialized transpose.
    logits = linear(x2, params["wte"], b=None, transpose_rhs=True,
                    out_dtype=jnp.float32)
    return logits.reshape(B, T, vocab_size)


# --------------------------------- main -------------------------------------

if __name__ == "__main__":
    vocab_size = 128
    max_len = 16
    hidden_size = 32
    num_heads = 4
    num_layers = 2
    B, T = 2, 8

    key = jax.random.PRNGKey(0)
    k_param, k_ids = jax.random.split(key)
    params = init_params(k_param, vocab_size, max_len, hidden_size,
                         num_heads, num_layers)
    input_ids = jax.random.randint(k_ids, (B, T), 0, vocab_size, dtype=jnp.int32)

    logits = gpt_forward(params, input_ids, num_heads)
    logits = jax.block_until_ready(logits)
    assert logits.shape == (B, T, vocab_size)
    assert bool(jnp.all(jnp.isfinite(logits)))
    print("KERNEL_OK")
</pallas_src>

<mosaic_0001>
module attributes {stable_mosaic.version = 11 : i64} {
  func.func @_linear_kernel(%arg0: i32, %arg1: i32, %arg2: i32, %arg3: memref<16x32xbf16, #tpu.memory_space<vmem>>, %arg4: memref<32x96xbf16, #tpu.memory_space<vmem>>, %arg5: memref<1x96xf32, #tpu.memory_space<vmem>>, %arg6: memref<16x96xbf16, #tpu.memory_space<vmem>>, %arg7: memref<16x96xf32, #tpu.memory_space<vmem>>) attributes {dimension_semantics = [#tpu.dimension_semantics<parallel>, #tpu.dimension_semantics<parallel>, #tpu.dimension_semantics<arbitrary>], iteration_bounds = array<i64: 1, 1, 1>, scalar_prefetch = 0 : i64, scratch_operands = 1 : i64, tpu.core_type = #tpu.core_type<tc>, window_params = [{transform_indices = @transform_0, window_bounds = array<i64: 16, 32>}, {transform_indices = @transform_1, window_bounds = array<i64: 32, 96>}, {transform_indices = @transform_2, window_bounds = array<i64: 1, 96>}, {transform_indices = @transform_3, window_bounds = array<i64: 16, 96>}]} {
    %c0_i32 = arith.constant 0 : i32
    %0 = arith.cmpi eq, %arg2, %c0_i32 : i32
    %1 = arith.extui %0 : i1 to i32
    %c0_i32_0 = arith.constant 0 : i32
    %2 = arith.cmpi ne, %1, %c0_i32_0 : i32
    scf.if %2 {
      %cst_10 = arith.constant 0.000000e+00 : f32
      %12 = vector.broadcast %cst_10 : f32 to vector<16x96xf32>
      %c0_11 = arith.constant 0 : index
      %c0_12 = arith.constant 0 : index
      %13 = vector.load %arg7[%c0_11, %c0_12] : memref<16x96xf32, #tpu.memory_space<vmem>>, vector<16x96xf32>
      tpu.vector_store %arg7[%c0_11, %c0_12], %12 {strides = array<i32>} : memref<16x96xf32, #tpu.memory_space<vmem>>, vector<16x96xf32>,
    } else {
    }
    %c0 = arith.constant 0 : index
    %c0_1 = arith.constant 0 : index
    %3 = vector.load %arg3[%c0, %c0_1] : memref<16x32xbf16, #tpu.memory_space<vmem>>, vector<16x32xbf16>
    %c0_2 = arith.constant 0 : index
    %c0_3 = arith.constant 0 : index
    %4 = vector.load %arg4[%c0_2, %c0_3] : memref<32x96xbf16, #tpu.memory_space<vmem>>, vector<32x96xbf16>
    %c0_4 = arith.constant 0 : index
    %c0_5 = arith.constant 0 : index
    %5 = vector.load %arg7[%c0_4, %c0_5] : memref<16x96xf32, #tpu.memory_space<vmem>>, vector<16x96xf32>
    %cst = arith.constant dense<0.000000e+00> : vector<16x96xf32>
    %6 = tpu.matmul %3, %4, %cst {dimension_numbers = #tpu.dot_dimension_numbers<[1], [0], [0], [1], [0, 0, 1, 1], [], []>} : vector<16x32xbf16>, vector<32x96xbf16>, vector<16x96xf32> -> vector<16x96xf32>
    %7 = arith.addf %5, %6 : vector<16x96xf32>
    %c0_6 = arith.constant 0 : index
    %c0_7 = arith.constant 0 : index
    %8 = vector.load %arg7[%c0_6, %c0_7] : memref<16x96xf32, #tpu.memory_space<vmem>>, vector<16x96xf32>
    tpu.vector_store %arg7[%c0_6, %c0_7], %7 {strides = array<i32>} : memref<16x96xf32, #tpu.memory_space<vmem>>, vector<16x96xf32>,
    %c0_i32_8 = arith.constant 0 : i32
    %9 = arith.cmpi eq, %arg2, %c0_i32_8 : i32
    %10 = arith.extui %9 : i1 to i32
    %c0_i32_9 = arith.constant 0 : i32
    %11 = arith.cmpi ne, %10, %c0_i32_9 : i32
    scf.if %11 {
      %c0_10 = arith.constant 0 : index
      %c0_11 = arith.constant 0 : index
      %12 = vector.load %arg7[%c0_10, %c0_11] : memref<16x96xf32, #tpu.memory_space<vmem>>, vector<16x96xf32>
      %c0_12 = arith.constant 0 : index
      %c0_13 = arith.constant 0 : index
      %13 = vector.load %arg5[%c0_12, %c0_13] : memref<1x96xf32, #tpu.memory_space<vmem>>, vector<1x96xf32>
      %14 = vector.broadcast %13 : vector<1x96xf32> to vector<16x96xf32>
      %15 = arith.addf %12, %14 : vector<16x96xf32>
      %16 = arith.truncf %15 : vector<16x96xf32> to vector<16x96xbf16>
      %c0_14 = arith.constant 0 : index
      %c0_15 = arith.constant 0 : index
      %17 = vector.load %arg6[%c0_14, %c0_15] : memref<16x96xbf16, #tpu.memory_space<vmem>>, vector<16x96xbf16>
      tpu.vector_store %arg6[%c0_14, %c0_15], %16 {strides = array<i32>} : memref<16x96xbf16, #tpu.memory_space<vmem>>, vector<16x96xbf16>,
    } else {
    }
    return
  }
  func.func @transform_0(%arg0: i32, %arg1: i32, %arg2: i32) -> (i32, i32) {
    %c0_i32 = arith.constant 0 : i32
    return %arg0, %arg2 : i32, i32
  }
  func.func @transform_1(%arg0: i32, %arg1: i32, %arg2: i32) -> (i32, i32) {
    %c0_i32 = arith.constant 0 : i32
    return %arg2, %arg1 : i32, i32
  }
  func.func @transform_2(%arg0: i32, %arg1: i32, %arg2: i32) -> (i32, i32) {
    %c0_i32 = arith.constant 0 : i32
    %c0_i32_0 = arith.constant 0 : i32
    return %c0_i32, %arg1 : i32, i32
  }
  func.func @transform_3(%arg0: i32, %arg1: i32, %arg2: i32) -> (i32, i32) {
    %c0_i32 = arith.constant 0 : i32
    return %arg0, %arg1 : i32, i32
  }
}

</mosaic_0001>

<bundles_post_ra>
// kernel: tpu_custom_call.1
= control target key start
LH: loop header
LB: loop body
LE: loop exit
PB: predicated region body
PF: predicated region fallthrough
CT: control target
= control target key end

     0   :  { %8 = vsyncpa [#allocation4], 0  ;;  %s317_s0 = inlined_call_operand.hbm [shape: bf16[16,32], index: 0, kind: input, shape index: {}]   ;;  %s318_s1 = inlined_call_operand.hbm [shape: bf16[32,96], index: 1, kind: input, shape index: {}]   ;;  %s319_s2 = inlined_call_operand.vmem [shape: f32[1,96], index: 2, kind: input, shape index: {}]   ;;  %s320_s3 = inlined_call_operand.hbm [shape: bf16[16,96], index: 3, kind: output, shape index: {}]  }
   0x1   :  { %9 = vsyncpa [#allocation7], 0 }
   0x2   :  { %10 = vsyncpa [#allocation5], 0  ;;  %s265_s12 = smov [#allocation3]  }
   0x3   :  { %s16_s13 = sshll.u32 %s265_s12, 4  ;;  %s17_s13 = int_to_ptr.vmem [resolvable:$true] %s16_s13 }
   0x4   :  { %s207_s14 = scalar_lea.vmem %s17_s13, 128  ;;  %p212_p1 = scmp.lt.s32.totalorder %s17_s13, %s17_s13 }
   0x5   :  { %p208_p0 = scmp.ne.s32.totalorder %s17_s13, %s207_s14  ;;  %p213_p2 = scmp.lt.s32.totalorder %s207_s14, %s207_s14 }
   0x7   :  { %p214_p3 = por %p213_p2, %p212_p1 }
   0x9   :  { %p215_p4 = pnand %p214_p3, %p208_p0 }
   0xb   :  { %218 = shalt.err (!%p215_p4)
}
   0xc   :  { %s266_s15 = smov 64   ;;  %s267_s16 = smov 4  }
   0xd   :  { %22 = dma.hbm_to_vmem [thread:$0]  %s317_s0, 128, %s17_s13, [#allocation4], %s266_s15, %s266_s15, %s267_s16  }
   0xe   :  { %s268_s19 = smov [#allocation6]  }
   0xf   :  { %s28_s20 = sshll.u32 %s268_s19, 4  ;;  %s29_s20 = int_to_ptr.vmem [resolvable:$true] %s28_s20 }
  0x10   :  { %s227_s21 = scalar_lea.vmem %s29_s20, 256  ;;  %p232_p6 = scmp.lt.s32.totalorder %s29_s20, %s29_s20 }
  0x11   :  { %p228_p5 = scmp.ne.s32.totalorder %s29_s20, %s227_s21  ;;  %p233_p7 = scmp.lt.s32.totalorder %s227_s21, %s227_s21 }
  0x13   :  { %p234_p8 = por %p233_p7, %p232_p6 }
  0x15   :  { %p235_p9 = pnand %p234_p8, %p228_p5 }
  0x17   :  { %238 = shalt.err (!%p235_p9)
}
  0x18   :  { %34 = dma.hbm_to_vmem [thread:$0]  %s318_s1, 256, %s29_s20, [#allocation7], %s266_s15, %s266_s15, %s267_s16  }
  0x19   :  { %259 = dma.done.wait [#allocation4], 128  }
  0x1a   :  { %260 = vsyncadd [#allocation4], 4294967168 }
  0x1b   :  { %261 = dma.done.wait [#allocation7], 256  }
  0x1c   :  { %262 = vsyncadd [#allocation7], 4294967040  ;;  %vm48_vm0 = vcmask 785408   ;;  %v269_v0 = vmov 0.0   ;;  %vm270_vm1 = vmmov 0   ;;  %v196_v1 = vld [vmem:[#allocation6 + $0x8] sm:$0xff]  }
  0x1d   :  { %49 = vst.msk [vmem:[#allocation2] sm:$0xff] %vm48_vm0, %v269_v0  ;;  %50 = vst.msk [vmem:[#allocation2 + $0x8] sm:$0xff] %vm48_vm0, %v269_v0  ;;  %181 = vmatprep.subr.bf16.mxu0 %v269_v0  ;;  %185 = vmatprep.mubr.msk.bf16.mxu0 %vm270_vm1, %v269_v0  ;;  %v197_v2 = vld [vmem:[#allocation6] sm:$0xff]   ;;  %v198_v3 = vld [vmem:[#allocation3] sm:$0xff]   ;;  %vm76_vm2 = vcmask 261120   ;;  %vm148_vm3 = vcmask 781312  }
  0x1e   :  { %182 = vmatpush3.bf16.msra.mxu0 %v196_v1  ;;  %v173_v12 = vld [vmem:[%s319_s2] ss:$0 sm:$0xff]  ;;  %s271_s24 = smov [#allocation8]  }
  0x1f   :  { %183 = vmatprep.subr.bf16.mxu0 %v269_v0  ;;  %s156_s25 = sshll.u32 %s271_s24, 4  ;;  %s157_s25 = int_to_ptr.vmem [resolvable:$true] %s156_s25 }
  0x20   :  { %s239_s26 = scalar_lea.vmem %s157_s25, 128  ;;  %p244_p11 = scmp.lt.s32.totalorder %s157_s25, %s157_s25 }
  0x21   :  { %p240_p10 = scmp.ne.s32.totalorder %s157_s25, %s239_s26  ;;  %p245_p12 = scmp.lt.s32.totalorder %s239_s26, %s239_s26 }
  0x22   :  { %184 = vmatpush3.bf16.msra.mxu0 %v197_v2 }
  0x23   :  { %p246_p13 = por %p245_p12, %p244_p11 }
  0x24   :  { %v57_v4 = vld [vmem:[#allocation2] sm:$0xff]  ;;  %v58_v8 = vld [vmem:[#allocation2 + $0x8] sm:$0xff] }
  0x25   :  { %186 = vmatmul.mubr.msk.bf16.vlgmr.msra.gmra.mxu0 %vm76_vm2, %v198_v3  ;;  %p247_p0 = pnand %p246_p13, %p240_p10 }
  0xe5   :  { %v114_v5 = vpop.f32.mrf.mxu0 }
  0xe6   :  { %v121_v6 = vadd.f32 %v114_v5, %v57_v4 }
  0xe7   :  { %v187_v7 = vpop.f32.mrf.mxu0 }
  0xe8   :  { %124 = vst.msk [vmem:[#allocation2] sm:$0xff] %vm48_vm0, %v121_v6 }
  0xe9   :  { %v117_v9 = vpop.f32.mrf.mxu0 }
  0xea   :  { %v122_v10 = vadd.f32 %v117_v9, %v58_v8 }
  0xeb   :  { %v188_v11 = vpop.f32.mrf.mxu0 }
  0xec   :  { %125 = vst.msk [vmem:[#allocation2 + $0x8] sm:$0xff] %vm48_vm0, %v122_v10 }
  0xef   :  { %v129_v13 = vld [vmem:[#allocation2] sm:$0xff] }
  0xf0   :  { %v138_v14 = vadd.f32 %v173_v12, %v129_v13 }
  0xf2   :  { %v176_v15 = vpack.c.bf16 %v138_v14, %v138_v14 }
  0xf3   :  { %v130_v16 = vld [vmem:[#allocation2 + $0x8] sm:$0xff] }
  0xf4   :  { %v139_v17 = vadd.f32 %v173_v12, %v130_v16  ;;  %149 = vst.msk [vmem:[#allocation8] sm:$0xf] %vm148_vm3, %v176_v15 }
  0xf6   :  { %v177_v18 = vpack.c.bf16 %v139_v17, %v139_v17 }
  0xf8   :  { %150 = vst.msk [vmem:[#allocation8 + $0x4] sm:$0xf] %vm148_vm3, %v177_v18 }
  0xf9   :  { %250 = shalt.err (!%p247_p0)
}
  0xfa   :  { %162 = dma.vmem_to_hbm [thread:$0]  %s157_s25, 128, %s320_s3, [#allocation5], %s266_s15, %s266_s15, %s267_s16  }
  0xfb   :  { %263 = dma.done.wait [#allocation5], 128  }
  0xfc   :  { %264 = vsyncadd [#allocation5], 4294967168 }
  0xfd   :  { %166 = vsyncpa [#allocation4], 1 }
  0xfe   :  { %167 = vsyncpa [#allocation7], 1 }
  0xff   :  { %168 = vsyncpa [#allocation5], 1 }

</bundles_post_ra>
